<compile_context>
chip_gen: v7x
topology: tpu7x:2x2x1
jax: 0.10.0
libtpu: 0.0.40
codegen_flags: <defaults>
</compile_context>

<pallas_src>
import jax
import jax.numpy as jnp
from jax.experimental import pallas as pl
from jax.experimental.pallas import tpu as pltpu

DIM_LIST = [126, 32, 1]   # matches Actor(dim_list=[126, 32, 1])
TILE_M_MAX = 2048         # batch rows per grid step (multiple of 128); sweepable


def _round_up(n, m):
    return ((n + m - 1) // m) * m


def _cdiv(a, b):
    return -(-a // b)


def _choose_tile(b, tile_m_max):
    """Balanced, lane-aligned batch tiles; >=2 grid steps once the batch is big
    enough to matter (so megacore sharding + double-buffering both engage)."""
    if b < 256:
        return b, 1                              # single full-array block
    tile_m_max = max(128, _round_up(tile_m_max, 128))
    n = max(2, _cdiv(b, tile_m_max))
    tm = min(tile_m_max, _round_up(_cdiv(b, n), 128))
    return tm, _cdiv(b, tm)


def actor_kernel(x_ref, w1_ref, b1_ref, w2t_ref, b2_ref, o_ref):
    # Layer 1: relu(x @ W1 + b1)  -- (tm,126)@(126,32) on the MXU, f32 accumulation.
    h = jnp.dot(x_ref[...], w1_ref[...], preferred_element_type=jnp.float32)
    h = jnp.maximum(h + b1_ref[...], 0.0)
    # Layer 2 in NT form so the result lands lane-dense: (1,32) x (tm,32)^T -> (1,tm).
    out_row = jax.lax.dot_general(
        w2t_ref[...], h,
        dimension_numbers=(((1,), (1,)), ((), ())),
        preferred_element_type=jnp.float32)
    # b2 is a single scalar read from SMEM.
    o_ref[0] = out_row + b2_ref[0]


def actor_forward(x, w1, b1, w2, b2, *, tile_m=TILE_M_MAX):
    """x: (B, 126) f32 or bf16 -> (B,) f32  (same as torch.squeeze(fc(x), dim=-1))."""
    B, d_in = x.shape
    d_hid = w1.shape[1]
    assert w2.shape[-1] == 1, "Actor head is scalar"

    # Weights are tiny and VMEM-resident; dtype of W1 matched to x for a 1-pass MXU dot.
    w1 = jnp.asarray(w1).astype(x.dtype)
    b1 = jnp.asarray(b1, jnp.float32).reshape(1, d_hid)
    w2t = jnp.asarray(w2, jnp.float32).reshape(d_hid, 1).T      # (1, d_hid)
    b2s = jnp.asarray(b2, jnp.float32).reshape(-1)               # (1,) scalar for SMEM

    tm, n_tiles = _choose_tile(B, tile_m)

    out3d = pl.pallas_call(
        actor_kernel,
        out_shape=jax.ShapeDtypeStruct((n_tiles, 1, tm), jnp.float32),
        grid=(n_tiles,),
        in_specs=[
            pl.BlockSpec((tm, d_in), lambda i: (i, 0)),          # x: streamed tiles
            pl.BlockSpec((d_in, d_hid), lambda i: (0, 0)),       # W1: resident
            pl.BlockSpec((1, d_hid), lambda i: (0, 0)),          # b1: resident
            pl.BlockSpec((1, d_hid), lambda i: (0, 0)),          # W2^T: resident
            pl.BlockSpec(memory_space=pltpu.MemorySpace.SMEM),   # b2: scalar in SMEM
        ],
        out_specs=pl.BlockSpec((1, 1, tm), lambda i: (i, 0, 0)),  # lane-dense rows
        compiler_params=pltpu.CompilerParams(
            dimension_semantics=("parallel",),   # batch tiles are independent
        ),
    )(x, w1, b1, w2t, b2s)

    # torch.squeeze(x, dim=-1); drop the partial-last-block tail.
    return out3d.reshape(-1)[:B]


def init_params(key, dim_list=DIM_LIST):
    """Deterministic init mimicking nn.Linear defaults (uniform +/- 1/sqrt(fan_in)).
    Weights returned pre-transposed to (in, out); biases as (1, out)."""
    params = []
    for i in range(len(dim_list) - 1):
        fan_in, fan_out = dim_list[i], dim_list[i + 1]
        key, kw, kb = jax.random.split(key, 3)
        bound = 1.0 / jnp.sqrt(jnp.asarray(fan_in, jnp.float32))
        w = jax.random.uniform(kw, (fan_in, fan_out), jnp.float32, -bound, bound)
        b = jax.random.uniform(kb, (1, fan_out), jnp.float32, -bound, bound)
        params.append((w, b))
    return params


def reference_forward(x, params):
    h = x.astype(jnp.float32)
    for i, (w, b) in enumerate(params):
        h = h @ w + b
        if i < len(params) - 1:
            h = jnp.maximum(h, 0.0)
    return h[:, 0]


if __name__ == "__main__":
    key = jax.random.PRNGKey(0)
    key, kx = jax.random.split(key)

    (w1, b1), (w2, b2) = init_params(key)
    params = [(w1, b1), (w2, b2)]

    # TODO(synk): update()/predict()/show() are host-side utilities (weight loading,
    # argmax+.item()) and are not part of the forward kernel.

    # Small f32 batches; the second is ragged (no padding copy is made for it).
    for B in (8, 5):
        kx, sub = jax.random.split(kx)
        x = jax.random.normal(sub, (B, DIM_LIST[0]), jnp.float32)
        out = jax.block_until_ready(actor_forward(x, w1, b1, w2, b2))
        ref = reference_forward(x, params)
        assert out.shape == (B,)
        assert jnp.allclose(out, ref, atol=1e-4, rtol=1e-4)

    # Multi-tile path with a partial last block (grid=3 at tile_m=256), f32.
    kx, sub = jax.random.split(kx)
    x = jax.random.normal(sub, (600, DIM_LIST[0]), jnp.float32)
    out = jax.block_until_ready(actor_forward(x, w1, b1, w2, b2, tile_m=256))
    ref = reference_forward(x, params)
    assert out.shape == (600,)
    assert jnp.allclose(out, ref, atol=1e-4, rtol=1e-4)

    # bf16-streamed activations (halves HBM read bytes); accumulation stays f32.
    out_bf = jax.block_until_ready(
        actor_forward(x.astype(jnp.bfloat16), w1, b1, w2, b2, tile_m=256))
    assert out_bf.shape == (600,)
    assert jnp.allclose(out_bf, ref, atol=2e-2, rtol=2e-2)

    print("KERNEL_OK")
</pallas_src>

<mosaic_0001>
module attributes {stable_mosaic.version = 11 : i64} {
  func.func @actor_kernel(%arg0: i32, %arg1: memref<8x126xf32, #tpu.memory_space<vmem>>, %arg2: memref<126x32xf32, #tpu.memory_space<vmem>>, %arg3: memref<1x32xf32, #tpu.memory_space<vmem>>, %arg4: memref<1x32xf32, #tpu.memory_space<vmem>>, %arg5: memref<1xf32, #tpu.memory_space<smem>>, %arg6: memref<1x1x8xf32, #tpu.memory_space<vmem>>) attributes {dimension_semantics = [#tpu.dimension_semantics<parallel>], iteration_bounds = array<i64: 1>, scalar_prefetch = 0 : i64, scratch_operands = 0 : i64, tpu.core_type = #tpu.core_type<tc>, window_params = [{transform_indices = @transform_0, window_bounds = array<i64: 8, 126>}, {pipeline_mode = #tpu.pipeline_mode<synchronous>, transform_indices = @transform_1, window_bounds = array<i64: 126, 32>}, {pipeline_mode = #tpu.pipeline_mode<synchronous>, transform_indices = @transform_2, window_bounds = array<i64: 1, 32>}, {pipeline_mode = #tpu.pipeline_mode<synchronous>, transform_indices = @transform_3, window_bounds = array<i64: 1, 32>}, {transform_indices = @transform_4, window_bounds = array<i64: 1>}, {transform_indices = @transform_5, window_bounds = array<i64: 1, 1, 8>}]} {
    %c0 = arith.constant 0 : index
    %c0_0 = arith.constant 0 : index
    %0 = vector.load %arg1[%c0, %c0_0] : memref<8x126xf32, #tpu.memory_space<vmem>>, vector<8x126xf32>
    %c0_1 = arith.constant 0 : index
    %c0_2 = arith.constant 0 : index
    %1 = vector.load %arg2[%c0_1, %c0_2] : memref<126x32xf32, #tpu.memory_space<vmem>>, vector<126x32xf32>
    %cst = arith.constant dense<0.000000e+00> : vector<8x32xf32>
    %2 = tpu.matmul %0, %1, %cst {dimension_numbers = #tpu.dot_dimension_numbers<[1], [0], [0], [1], [0, 0, 1, 1], [], []>} : vector<8x126xf32>, vector<126x32xf32>, vector<8x32xf32> -> vector<8x32xf32>
    %c0_3 = arith.constant 0 : index
    %c0_4 = arith.constant 0 : index
    %3 = vector.load %arg3[%c0_3, %c0_4] : memref<1x32xf32, #tpu.memory_space<vmem>>, vector<1x32xf32>
    %4 = vector.broadcast %3 : vector<1x32xf32> to vector<8x32xf32>
    %5 = arith.addf %2, %4 : vector<8x32xf32>
    %cst_5 = arith.constant 0.000000e+00 : f32
    %6 = vector.broadcast %cst_5 : f32 to vector<8x32xf32>
    %7 = arith.maximumf %5, %6 : vector<8x32xf32>
    %c0_6 = arith.constant 0 : index
    %c0_7 = arith.constant 0 : index
    %8 = vector.load %arg4[%c0_6, %c0_7] : memref<1x32xf32, #tpu.memory_space<vmem>>, vector<1x32xf32>
    %cst_8 = arith.constant dense<0.000000e+00> : vector<1x8xf32>
    %9 = tpu.matmul %8, %7, %cst_8 {dimension_numbers = #tpu.dot_dimension_numbers<[1], [1], [0], [0], [0, 0, 1, 0], [], []>} : vector<1x32xf32>, vector<8x32xf32>, vector<1x8xf32> -> vector<1x8xf32>
    %c0_9 = arith.constant 0 : index
    %10 = memref.load %arg5[%c0_9] : memref<1xf32, #tpu.memory_space<smem>>
    %11 = vector.broadcast %10 : f32 to vector<1x8xf32>
    %12 = arith.addf %9, %11 : vector<1x8xf32>
    %c0_10 = arith.constant 0 : index
    %c0_11 = arith.constant 0 : index
    %c0_12 = arith.constant 0 : index
    %13 = vector.load %arg6[%c0_10, %c0_11, %c0_12] : memref<1x1x8xf32, #tpu.memory_space<vmem>>, vector<1x1x8xf32>
    %14 = vector.shape_cast %13 : vector<1x1x8xf32> to vector<1x8xf32>
    %15 = vector.shape_cast %12 : vector<1x8xf32> to vector<1x1x8xf32>
    tpu.vector_store %arg6[%c0_10, %c0_11, %c0_12], %15 {strides = array<i32>} : memref<1x1x8xf32, #tpu.memory_space<vmem>>, vector<1x1x8xf32>,
    return
  }
  func.func @transform_0(%arg0: i32) -> (i32, i32) {
    %c0_i32 = arith.constant 0 : i32
    %c0_i32_0 = arith.constant 0 : i32
    return %arg0, %c0_i32 : i32, i32
  }
  func.func @transform_1(%arg0: i32) -> (i32, i32) {
    %c0_i32 = arith.constant 0 : i32
    %c0_i32_0 = arith.constant 0 : i32
    %c0_i32_1 = arith.constant 0 : i32
    return %c0_i32, %c0_i32_0 : i32, i32
  }
  func.func @transform_2(%arg0: i32) -> (i32, i32) {
    %c0_i32 = arith.constant 0 : i32
    %c0_i32_0 = arith.constant 0 : i32
    %c0_i32_1 = arith.constant 0 : i32
    return %c0_i32, %c0_i32_0 : i32, i32
  }
  func.func @transform_3(%arg0: i32) -> (i32, i32) {
    %c0_i32 = arith.constant 0 : i32
    %c0_i32_0 = arith.constant 0 : i32
    %c0_i32_1 = arith.constant 0 : i32
    return %c0_i32, %c0_i32_0 : i32, i32
  }
  func.func @transform_4(%arg0: i32) -> i32 {
    %c0_i32 = arith.constant 0 : i32
    %c0_i32_0 = arith.constant 0 : i32
    return %c0_i32 : i32
  }
  func.func @transform_5(%arg0: i32) -> (i32, i32, i32) {
    %c0_i32 = arith.constant 0 : i32
    %c0_i32_0 = arith.constant 0 : i32
    %c0_i32_1 = arith.constant 0 : i32
    return %arg0, %c0_i32, %c0_i32_0 : i32, i32, i32
  }
}

</mosaic_0001>

<bundles_post_ra>
// kernel: tpu_custom_call.1
= control target key start
LH: loop header
LB: loop body
LE: loop exit
PB: predicated region body
PF: predicated region fallthrough
CT: control target
= control target key end

     0   :  { %v339_v3 = vmov 0.0|0.0   ;;  %vm340_vm0 = vmmov 0   ;;  %v341_v6 = vmov 0.0   ;;  %s446_s0 = inlined_call_operand.vmem [shape: f32[8,126], index: 0, kind: input, shape index: {}]   ;;  %s447_s1 = inlined_call_operand.vmem [shape: f32[126,32], index: 1, kind: input, shape index: {}]   ;;  %s448_s2 = inlined_call_operand.vmem [shape: f32[1,32], index: 2, kind: input, shape index: {}]   ;;  %s449_s3 = inlined_call_operand.vmem [shape: f32[1,32], index: 3, kind: input, shape index: {}]   ;;  %s450_s4 = inlined_call_operand.<no memory space> [shape: f32[1], index: 4, kind: input, shape index: {}]   ;;  %s451_s5 = inlined_call_operand.hbm [shape: f32[1,1,8], index: 5, kind: output, shape index: {}]  }
   0x1   :  { %v23_v0 = vld [vmem:[%s447_s1] sm:$0xff]  ;;  %v24_v1 = vld [vmem:[%s447_s1 + $0x8] sm:$0xff]  ;;  %v25_v2 = vld [vmem:[%s447_s1 + $0x10] sm:$0xff]  ;;  %285 = vmatprep.subr.bf16.mxu0 %v339_v3  ;;  %277 = vmatprep.mubr.msk.f32.mxu0 %vm340_vm0, %v341_v6 }
   0x2   :  { %v286_v4 = vpack.c.bf16 %v24_v1, %v23_v0  ;;  %v26_v5 = vld [vmem:[%s447_s1 + $0x18] sm:$0xff]  ;;  %280 = vmatprep.subr.mxu1 %v341_v6  ;;  %282 = vmatprep.mubr.msk.f32.mxu1 %vm340_vm0, %v341_v6  ;;  %v27_v8 = vld [vmem:[%s447_s1 + $0x20] sm:$0xff]  ;;  %v28_v9 = vld [vmem:[%s447_s1 + $0x28] sm:$0xff] }
   0x3   :  { %v289_v7 = vpack.c.bf16 %v26_v5, %v25_v2 }
   0x4   :  { %287 = vmatpush3.bf16.msra.mxu0 %v286_v4 }
   0x5   :  { %288 = vmatprep.subr.bf16.mxu0 %v339_v3 }
   0x6   :  { %11 = vsyncpa [#allocation4], 0  ;;  %v292_v10 = vpack.c.bf16 %v28_v9, %v27_v8  ;;  %v29_v11 = vld [vmem:[%s447_s1 + $0x30] sm:$0xff]  ;;  %v30_v12 = vld [vmem:[%s447_s1 + $0x38] sm:$0xff]  ;;  %vm50_vm1 = vcmask 1045504   ;;  %vm342_vm2 = vmmov 1   ;;  %v127_v33 = vstv %s450_s4 }
   0x7   :  { %v295_v13 = vpack.c.bf16 %v30_v12, %v29_v11  ;;  %v31_v14 = vld [vmem:[%s447_s1 + $0x40] sm:$0xff]  ;;  %v32_v15 = vld [vmem:[%s447_s1 + $0x48] sm:$0xff]  ;;  %v33_v17 = vld [vmem:[%s447_s1 + $0x50] sm:$0xff]  ;;  %vm46_vm4 = vcmask 1031168   ;;  %vm128_vm5 = vcmask 261120   ;;  %vm205_vm6 = vcmask 57344  }
   0x8   :  { %290 = vmatpush3.bf16.msra.mxu0 %v289_v7  ;;  %v298_v16 = vpack.c.bf16 %v32_v15, %v31_v14  ;;  %v34_v18 = vld [vmem:[%s447_s1 + $0x58] sm:$0xff]  ;;  %v35_v20 = vld [vmem:[%s447_s1 + $0x60] sm:$0xff]  ;;  %v36_v21 = vld [vmem:[%s447_s1 + $0x68] sm:$0xff] }
   0x9   :  { %291 = vmatprep.subr.bf16.mxu0 %v339_v3  ;;  %v301_v19 = vpack.c.bf16 %v34_v18, %v33_v17  ;;  %v304_v22 = vpack.c.bf16 %v36_v21, %v35_v20  ;;  %v37_v23 = vld [vmem:[%s447_s1 + $0x70] sm:$0xff]  ;;  %v38_v24 = vld [vmem:[%s447_s1 + $0x78] sm:$0x3f]  ;;  %vm308_vm3 = vmpackc.low %vm50_vm1, %vm342_vm2 }
   0xa   :  { %v307_v25 = vpack.c.bf16 %v38_v24, %v37_v23  ;;  %v22_v26 = vld [vmem:[%s446_s0] sm:$0xff]  ;;  %s343_s0 = smov [#allocation3]  }
   0xb   :  { %v221_v27 = vld [vmem:[%s448_s2] ss:$0 sm:$0xff]  ;;  %s213_s7 = sshll.u32 %s343_s0, 4  ;;  %s214_s7 = int_to_ptr.vmem [resolvable:$true] %s213_s7 }
   0xc   :  { %293 = vmatpush3.bf16.msra.mxu0 %v292_v10  ;;  %v125_v32 = vld [vmem:[%s449_s3] sm:$0x1]  ;;  %s315_s2 = scalar_lea.vmem %s214_s7, 16  ;;  %s319_s8 = scalar_lea.vmem %s214_s7, 32 }
   0xd   :  { %294 = vmatprep.subr.bf16.mxu0 %v339_v3  ;;  %p316_p0 = scmp.ne.s32.totalorder %s214_s7, %s315_s2  ;;  %p320_p1 = scmp.lt.s32.totalorder %s214_s7, %s214_s7 }
   0xe   :  { %p321_p2 = scmp.lt.s32.totalorder %s319_s8, %s315_s2 }
  0x10   :  { %296 = vmatpush3.bf16.msra.mxu0 %v295_v13  ;;  %p322_p3 = por %p321_p2, %p320_p1 }
  0x11   :  { %297 = vmatprep.subr.bf16.mxu0 %v339_v3 }
  0x12   :  { %p323_p4 = pnand %p322_p3, %p316_p0 }
  0x14   :  { %299 = vmatpush3.bf16.msra.mxu0 %v298_v16 }
  0x15   :  { %300 = vmatprep.subr.bf16.mxu0 %v339_v3 }
  0x18   :  { %302 = vmatpush3.bf16.msra.mxu0 %v301_v19 }
  0x19   :  { %303 = vmatprep.subr.bf16.mxu0 %v339_v3 }
  0x1c   :  { %305 = vmatpush3.bf16.msra.mxu0 %v304_v22 }
  0x1d   :  { %306 = vmatprep.subr.bf16.mxu0 %v339_v3 }
  0x20   :  { %309 = vmatpush3.bf16.msk.msra.mxu0 %vm308_vm3, %v307_v25 }
  0x23   :  { %278 = vmatmul.mubr.msk.f32.vlgmr.msra.gmra.mrb[0].mxu0 %vm46_vm4, %v22_v26 }
  0xf6   :  { %v120_v28 = vpop.f32.mrb[0].mxu0 }
  0xf7   :  { %v121_v29 = vadd.f32 %v221_v27, %v120_v28  ;;  %v279_v30 = vpop.f32.mrb[1].mxu0 }
  0xf9   :  { %v124_v31 = vmax.f32 %v121_v29, 0.0 }
  0xfb   :  { %281 = vmatpush3.xpose.msk.msra.mxu1 %vm128_vm5, %v124_v31 }
  0xfe   :  { %283 = vmatmul.mubr.msk.f32.vlgmr.msra.gmra.mrb[0].mxu1 %vm128_vm5, %v125_v32 }
 0x1d1   :  { %v201_v34 = vpop.f32.mrb[0].mxu1 }
 0x1d2   :  { %v202_v35 = vadd.f32 %v201_v34, %v127_v33  ;;  %v284_v36 = vpop.f32.mrb[1].mxu1 }
 0x1d4   :  { %206 = vst.msk [vmem:[#allocation3] sm:$0x1] %vm205_vm6, %v202_v35 }
 0x1d5   :  { %326 = shalt.err (!%p323_p4)
}
 0x1d6   :  { %s327_s4 = scalar_lea.hbm %s451_s5, 16 }
 0x1d7   :  { %p328_p5 = scmp.ne.s32.totalorder %s451_s5, %s327_s4  ;;  %p331_p6 = scmp.lt.u32.totalorder %s327_s4, %s451_s5 }
 0x1d9   :  { %p333_p7 = pnand %p331_p6, %p328_p5 }
 0x1db   :  { %336 = shalt.err (!%p333_p7)
}
 0x1dc   :  { %216 = dma.vmem_to_hbm [thread:$0]  %s214_s7, 16, %s451_s5, [#allocation4]  }
 0x1dd   :  { %337 = dma.done.wait [#allocation4], 16  }
 0x1de   :  { %338 = vsyncadd [#allocation4], 4294967280 }
 0x1df   :  { %220 = vsyncpa [#allocation4], 1 }

</bundles_post_ra>
